<compile_context>
chip_gen: v7x
topology: tpu7x:2x2x1
jax: 0.10.0
libtpu: 0.0.40
codegen_flags: <defaults>
</compile_context>

<pallas_src>
import math

import jax
import jax.numpy as jnp
from jax.experimental import pallas as pl
from jax.experimental.pallas import tpu as pltpu


def _round_up(x, m):
    return ((x + m - 1) // m) * m


def _vmem_capacity_bytes():
    """Physical VMEM per TensorCore; conservative 64 MiB (v7x) fallback."""
    try:
        cap = int(pltpu.get_tpu_info().vmem_capacity_bytes)
        if cap > 0:
            return min(cap, 128 << 20)
    except Exception:
        pass
    return 64 << 20


def _largest_h_tile(H, th_req):
    """Largest multiple of 128 that divides H and is <= th_req (else full H)."""
    best = None
    d = 128
    limit = min(H, max(th_req, 128))
    while d <= limit:
        if H % d == 0:
            best = d
        d += 128
    return best if best is not None else H


def _plan_tiles(M, C, H, bpe, tm_req, th_req, budget, force_streaming):
    """Pick (resident?, tm, th, vmem_need)."""
    m8 = _round_up(max(M, 1), 8)

    def resident_need(tm):
        return ((2 * C * H + H + C) * bpe          # W1/W2/b1/b2, single-buffered
                + 4 * tm * C * bpe                 # x + out tiles, double-buffered
                + tm * C * 4                       # f32 accumulator scratch
                + tm * H * (8 + bpe))              # h (f32) + erf temps + cast

    def streaming_need(tm, th):
        return (2 * (2 * C * th + th) * bpe        # W1/W2/b1 slabs, double-buffered
                + C * bpe                          # b2, single-buffered
                + 4 * tm * C * bpe                 # x + out tiles, double-buffered
                + tm * C * 4                       # f32 accumulator scratch
                + tm * th * (8 + bpe))             # intermediates

    if not force_streaming:
        tm = min(tm_req, m8)
        while True:
            if resident_need(tm) <= budget:
                # v7x shards the "parallel" row axis over 2 TensorCores; make
                # sure there are >= 2 row tiles (cheap here: weights resident).
                if pl.cdiv(M, tm) == 1 and M >= 16:
                    tm = _round_up(-(-M // 2), 8)
                return True, tm, H, resident_need(tm)
            if tm <= 128:
                break
            tm = max(128, _round_up(tm // 2, 8))

    th = _largest_h_tile(H, th_req)
    tm = min(tm_req, m8)
    while streaming_need(tm, th) > budget and tm > 128:
        tm = max(128, _round_up(tm // 2, 8))
    while (streaming_need(tm, th) > budget and th > 128
           and (th // 2) % 128 == 0 and H % (th // 2) == 0):
        th //= 2
    return False, tm, th, streaming_need(tm, th)


def mlp_kernel(x_ref, w1_ref, b1_ref, w2_ref, b2_ref, o_ref, acc_ref):
    """One (row-tile, H-slab) step of the fused MLP.

    x_ref:  (tm, C)       rows of the flattened (B*T, C) activations
    w1_ref: (C, th)       slab of c_fc weight (stored (in, out))
    b1_ref: (1, th)       slab of c_fc bias
    w2_ref: (th, C)       slab of c_proj weight (stored (in, out))
    b2_ref: (1, C)        c_proj bias (grid-constant, single-buffered block)
    o_ref:  (tm, C)       output rows
    acc_ref:(tm, C) f32   accumulator over the H (reduction) grid axis
    """
    j = pl.program_id(1)

    @pl.when(j == 0)
    def _():
        acc_ref[...] = jnp.zeros_like(acc_ref)

    # c_fc slab: native-dtype operands on the MXU, f32 accumulation.
    h = jnp.dot(x_ref[...], w1_ref[...], preferred_element_type=jnp.float32)
    h = h + b1_ref[...].astype(jnp.float32)

    # Exact GELU (PyTorch nn.GELU default): 0.5*h*(1+erf(h/sqrt(2))).
    # (tanh-approx GELU would move work VPU->EUP but changes numerics; the
    #  module spec uses the erf form, so keep it in f32.)
    h = 0.5 * h * (1.0 + jax.lax.erf(h * (1.0 / math.sqrt(2.0))))

    # c_proj slab: accumulate over the H reduction into the f32 scratch.
    acc_ref[...] += jnp.dot(h.astype(w2_ref.dtype), w2_ref[...],
                            preferred_element_type=jnp.float32)

    @pl.when(j == pl.num_programs(1) - 1)
    def _():
        # b2 added exactly once, in the finalize branch.  Dropout (eval) == id.
        o_ref[...] = (acc_ref[...] + b2_ref[...].astype(jnp.float32)
                      ).astype(o_ref.dtype)


def mlp_forward(x, w1, b1, w2, b2, *, tm=512, th=1024, force_streaming=False):
    """Fused MLP forward.

    x:  (B, T, C);  w1: (C, 4C);  b1: (4C,);  w2: (4C, C);  b2: (C,)
    (w1/w2 are transposed relative to PyTorch nn.Linear's (out, in) storage.)
    """
    B, T, C = x.shape
    H = w1.shape[1]
    M = B * T
    bpe = jnp.dtype(x.dtype).itemsize

    vmem_cap = _vmem_capacity_bytes()
    budget = vmem_cap - (16 << 20)              # headroom for Mosaic internals
    resident, tm_eff, th_eff, need = _plan_tiles(
        M, C, H, bpe, tm, th, budget, force_streaming)

    # No wrapper-side padding: the ragged last row block (if any) is masked by
    # Pallas; rows are independent so out-of-bounds rows cannot pollute valid
    # outputs.  reshape of a contiguous (B,T,C) array is free.
    x2 = x.reshape(M, C)
    b1_2 = b1.reshape(1, H)
    b2_2 = b2.reshape(1, C)

    n_i = pl.cdiv(M, tm_eff)
    n_j = H // th_eff                           # th_eff divides H by construction

    if resident:
        # Constant block index + single buffer => weights DMA'd from HBM once.
        w1_spec = pl.BlockSpec((C, H), lambda i, j: (0, 0),
                               pipeline_mode=pl.Buffered(1))
        b1_spec = pl.BlockSpec((1, H), lambda i, j: (0, 0),
                               pipeline_mode=pl.Buffered(1))
        w2_spec = pl.BlockSpec((H, C), lambda i, j: (0, 0),
                               pipeline_mode=pl.Buffered(1))
    else:
        w1_spec = pl.BlockSpec((C, th_eff), lambda i, j: (0, j))
        b1_spec = pl.BlockSpec((1, th_eff), lambda i, j: (0, j))
        w2_spec = pl.BlockSpec((th_eff, C), lambda i, j: (j, 0))
    b2_spec = pl.BlockSpec((1, C), lambda i, j: (0, 0),
                           pipeline_mode=pl.Buffered(1))

    vmem_limit = int(min(vmem_cap, max(need + (16 << 20), 32 << 20)))

    out = pl.pallas_call(
        mlp_kernel,
        out_shape=jax.ShapeDtypeStruct((M, C), x.dtype),
        grid_spec=pltpu.PrefetchScalarGridSpec(
            num_scalar_prefetch=0,
            grid=(n_i, n_j),                    # reduction (H) axis last
            in_specs=[
                pl.BlockSpec((tm_eff, C), lambda i, j: (i, 0)),   # x rows
                w1_spec, b1_spec, w2_spec, b2_spec,
            ],
            out_specs=pl.BlockSpec((tm_eff, C), lambda i, j: (i, 0)),
            scratch_shapes=[pltpu.VMEM((tm_eff, C), jnp.float32)],
        ),
        compiler_params=pltpu.CompilerParams(
            dimension_semantics=("parallel", "arbitrary"),
            vmem_limit_bytes=vmem_limit,
        ),
    )(x2, w1, b1_2, w2, b2_2)

    return out.reshape(B, T, C)


def reference_mlp(x, w1, b1, w2, b2):
    hi = jax.lax.Precision.HIGHEST
    h = jnp.einsum("btc,ch->bth", x, w1, precision=hi) + b1
    h = 0.5 * h * (1.0 + jax.lax.erf(h / jnp.sqrt(2.0)))
    o = jnp.einsum("bth,hc->btc", h, w2, precision=hi) + b2
    return o


def _make_params(key, C, H, dtype=jnp.float32):
    k1, k2, k3, k4 = jax.random.split(key, 4)
    w1 = jax.random.normal(k1, (C, H), dtype=dtype) * (1.0 / math.sqrt(C))
    b1 = jax.random.normal(k2, (H,), dtype=dtype) * 0.01
    w2 = jax.random.normal(k3, (H, C), dtype=dtype) * (1.0 / math.sqrt(H))
    b2 = jax.random.normal(k4, (C,), dtype=dtype) * 0.01
    return w1, b1, w2, b2


if __name__ == "__main__":
    key = jax.random.PRNGKey(0)
    k_a, k_b, k_c = jax.random.split(key, 3)

    # Test 1: toy config matching the module at small scale (n_embd=32).
    # Resident-weights path, row tile split in two (megacore-friendly).
    B, T, C = 2, 8, 32
    H = 4 * C
    kx, kp = jax.random.split(k_a)
    x = jax.random.normal(kx, (B, T, C), dtype=jnp.float32)
    w1, b1, w2, b2 = _make_params(kp, C, H)
    out = jax.block_until_ready(mlp_forward(x, w1, b1, w2, b2))
    ref = reference_mlp(x, w1, b1, w2, b2)
    assert out.shape == (B, T, C)
    assert jnp.allclose(out, ref, atol=2e-4, rtol=2e-4), "mismatch vs reference (test 1)"

    # Test 2: forced streaming path — ragged last row block (M=46), multiple
    # row tiles, H-slab accumulator (grid = (3, 4)).
    B2, T2, C2 = 2, 23, 128
    H2 = 4 * C2
    kx2, kp2 = jax.random.split(k_b)
    x2 = jax.random.normal(kx2, (B2, T2, C2), dtype=jnp.float32)
    w1b, b1b, w2b, b2b = _make_params(kp2, C2, H2)
    out2 = jax.block_until_ready(
        mlp_forward(x2, w1b, b1b, w2b, b2b, tm=16, th=128, force_streaming=True))
    ref2 = reference_mlp(x2, w1b, b1b, w2b, b2b)
    assert out2.shape == (B2, T2, C2)
    assert jnp.allclose(out2, ref2, atol=2e-4, rtol=2e-4), "mismatch vs reference (test 2)"

    # Test 3: resident path with multiple row tiles at a slightly larger shape.
    B3, T3, C3 = 2, 64, 128
    H3 = 4 * C3
    kx3, kp3 = jax.random.split(k_c)
    x3 = jax.random.normal(kx3, (B3, T3, C3), dtype=jnp.float32)
    w1c, b1c, w2c, b2c = _make_params(kp3, C3, H3)
    out3 = jax.block_until_ready(mlp_forward(x3, w1c, b1c, w2c, b2c))
    ref3 = reference_mlp(x3, w1c, b1c, w2c, b2c)
    assert out3.shape == (B3, T3, C3)
    assert jnp.allclose(out3, ref3, atol=2e-4, rtol=2e-4), "mismatch vs reference (test 3)"

    print("KERNEL_OK")
</pallas_src>

<mosaic_0001>
module attributes {stable_mosaic.version = 11 : i64} {
  func.func @mlp_kernel(%arg0: i32, %arg1: i32, %arg2: memref<8x32xf32, #tpu.memory_space<vmem>>, %arg3: memref<32x128xf32, #tpu.memory_space<vmem>>, %arg4: memref<1x128xf32, #tpu.memory_space<vmem>>, %arg5: memref<128x32xf32, #tpu.memory_space<vmem>>, %arg6: memref<1x32xf32, #tpu.memory_space<vmem>>, %arg7: memref<8x32xf32, #tpu.memory_space<vmem>>, %arg8: memref<8x32xf32, #tpu.memory_space<vmem>>) attributes {dimension_semantics = [#tpu.dimension_semantics<parallel>, #tpu.dimension_semantics<arbitrary>], iteration_bounds = array<i64: 2, 1>, scalar_prefetch = 0 : i64, scratch_operands = 1 : i64, tpu.core_type = #tpu.core_type<tc>, window_params = [{transform_indices = @transform_0, window_bounds = array<i64: 8, 32>}, {pipeline_mode = #tpu.pipeline_mode<synchronous>, transform_indices = @transform_1, window_bounds = array<i64: 32, 128>}, {pipeline_mode = #tpu.pipeline_mode<synchronous>, transform_indices = @transform_2, window_bounds = array<i64: 1, 128>}, {pipeline_mode = #tpu.pipeline_mode<synchronous>, transform_indices = @transform_3, window_bounds = array<i64: 128, 32>}, {pipeline_mode = #tpu.pipeline_mode<synchronous>, transform_indices = @transform_4, window_bounds = array<i64: 1, 32>}, {transform_indices = @transform_5, window_bounds = array<i64: 8, 32>}]} {
    %c0_i32 = arith.constant 0 : i32
    %0 = arith.cmpi eq, %arg1, %c0_i32 : i32
    %1 = arith.extui %0 : i1 to i32
    %c0_i32_0 = arith.constant 0 : i32
    %2 = arith.cmpi ne, %1, %c0_i32_0 : i32
    scf.if %2 {
      %cst_18 = arith.constant 0.000000e+00 : f32
      %25 = vector.broadcast %cst_18 : f32 to vector<8x32xf32>
      %c0_19 = arith.constant 0 : index
      %c0_20 = arith.constant 0 : index
      %26 = vector.load %arg8[%c0_19, %c0_20] : memref<8x32xf32, #tpu.memory_space<vmem>>, vector<8x32xf32>
      tpu.vector_store %arg8[%c0_19, %c0_20], %25 {strides = array<i32>} : memref<8x32xf32, #tpu.memory_space<vmem>>, vector<8x32xf32>,
    } else {
    }
    %c0 = arith.constant 0 : index
    %c0_1 = arith.constant 0 : index
    %3 = vector.load %arg2[%c0, %c0_1] : memref<8x32xf32, #tpu.memory_space<vmem>>, vector<8x32xf32>
    %c0_2 = arith.constant 0 : index
    %c0_3 = arith.constant 0 : index
    %4 = vector.load %arg3[%c0_2, %c0_3] : memref<32x128xf32, #tpu.memory_space<vmem>>, vector<32x128xf32>
    %cst = arith.constant dense<0.000000e+00> : vector<8x128xf32>
    %5 = tpu.matmul %3, %4, %cst {dimension_numbers = #tpu.dot_dimension_numbers<[1], [0], [0], [1], [0, 0, 1, 1], [], []>} : vector<8x32xf32>, vector<32x128xf32>, vector<8x128xf32> -> vector<8x128xf32>
    %c0_4 = arith.constant 0 : index
    %c0_5 = arith.constant 0 : index
    %6 = vector.load %arg4[%c0_4, %c0_5] : memref<1x128xf32, #tpu.memory_space<vmem>>, vector<1x128xf32>
    %7 = vector.broadcast %6 : vector<1x128xf32> to vector<8x128xf32>
    %8 = arith.addf %5, %7 : vector<8x128xf32>
    %cst_6 = arith.constant 5.000000e-01 : f32
    %9 = vector.broadcast %cst_6 : f32 to vector<8x128xf32>
    %10 = arith.mulf %9, %8 : vector<8x128xf32>
    %cst_7 = arith.constant 0.707106769 : f32
    %11 = vector.broadcast %cst_7 : f32 to vector<8x128xf32>
    %12 = arith.mulf %8, %11 : vector<8x128xf32>
    %13 = math.erf %12 : vector<8x128xf32>
    %cst_8 = arith.constant 1.000000e+00 : f32
    %14 = vector.broadcast %cst_8 : f32 to vector<8x128xf32>
    %15 = arith.addf %14, %13 : vector<8x128xf32>
    %16 = arith.mulf %10, %15 : vector<8x128xf32>
    %c0_9 = arith.constant 0 : index
    %c0_10 = arith.constant 0 : index
    %17 = vector.load %arg8[%c0_9, %c0_10] : memref<8x32xf32, #tpu.memory_space<vmem>>, vector<8x32xf32>
    %c0_11 = arith.constant 0 : index
    %c0_12 = arith.constant 0 : index
    %18 = vector.load %arg5[%c0_11, %c0_12] : memref<128x32xf32, #tpu.memory_space<vmem>>, vector<128x32xf32>
    %cst_13 = arith.constant dense<0.000000e+00> : vector<8x32xf32>
    %19 = tpu.matmul %16, %18, %cst_13 {dimension_numbers = #tpu.dot_dimension_numbers<[1], [0], [0], [1], [0, 0, 1, 1], [], []>} : vector<8x128xf32>, vector<128x32xf32>, vector<8x32xf32> -> vector<8x32xf32>
    %20 = arith.addf %17, %19 : vector<8x32xf32>
    %c0_14 = arith.constant 0 : index
    %c0_15 = arith.constant 0 : index
    %21 = vector.load %arg8[%c0_14, %c0_15] : memref<8x32xf32, #tpu.memory_space<vmem>>, vector<8x32xf32>
    tpu.vector_store %arg8[%c0_14, %c0_15], %20 {strides = array<i32>} : memref<8x32xf32, #tpu.memory_space<vmem>>, vector<8x32xf32>,
    %c0_i32_16 = arith.constant 0 : i32
    %22 = arith.cmpi eq, %arg1, %c0_i32_16 : i32
    %23 = arith.extui %22 : i1 to i32
    %c0_i32_17 = arith.constant 0 : i32
    %24 = arith.cmpi ne, %23, %c0_i32_17 : i32
    scf.if %24 {
      %c0_18 = arith.constant 0 : index
      %c0_19 = arith.constant 0 : index
      %25 = vector.load %arg8[%c0_18, %c0_19] : memref<8x32xf32, #tpu.memory_space<vmem>>, vector<8x32xf32>
      %c0_20 = arith.constant 0 : index
      %c0_21 = arith.constant 0 : index
      %26 = vector.load %arg6[%c0_20, %c0_21] : memref<1x32xf32, #tpu.memory_space<vmem>>, vector<1x32xf32>
      %27 = vector.broadcast %26 : vector<1x32xf32> to vector<8x32xf32>
      %28 = arith.addf %25, %27 : vector<8x32xf32>
      %c0_22 = arith.constant 0 : index
      %c0_23 = arith.constant 0 : index
      %29 = vector.load %arg7[%c0_22, %c0_23] : memref<8x32xf32, #tpu.memory_space<vmem>>, vector<8x32xf32>
      tpu.vector_store %arg7[%c0_22, %c0_23], %28 {strides = array<i32>} : memref<8x32xf32, #tpu.memory_space<vmem>>, vector<8x32xf32>,
    } else {
    }
    return
  }
  func.func @transform_0(%arg0: i32, %arg1: i32) -> (i32, i32) {
    %c0_i32 = arith.constant 0 : i32
    %c0_i32_0 = arith.constant 0 : i32
    return %arg0, %c0_i32 : i32, i32
  }
  func.func @transform_1(%arg0: i32, %arg1: i32) -> (i32, i32) {
    %c0_i32 = arith.constant 0 : i32
    %c0_i32_0 = arith.constant 0 : i32
    %c0_i32_1 = arith.constant 0 : i32
    return %c0_i32, %c0_i32_0 : i32, i32
  }
  func.func @transform_2(%arg0: i32, %arg1: i32) -> (i32, i32) {
    %c0_i32 = arith.constant 0 : i32
    %c0_i32_0 = arith.constant 0 : i32
    %c0_i32_1 = arith.constant 0 : i32
    return %c0_i32, %c0_i32_0 : i32, i32
  }
  func.func @transform_3(%arg0: i32, %arg1: i32) -> (i32, i32) {
    %c0_i32 = arith.constant 0 : i32
    %c0_i32_0 = arith.constant 0 : i32
    %c0_i32_1 = arith.constant 0 : i32
    return %c0_i32, %c0_i32_0 : i32, i32
  }
  func.func @transform_4(%arg0: i32, %arg1: i32) -> (i32, i32) {
    %c0_i32 = arith.constant 0 : i32
    %c0_i32_0 = arith.constant 0 : i32
    %c0_i32_1 = arith.constant 0 : i32
    return %c0_i32, %c0_i32_0 : i32, i32
  }
  func.func @transform_5(%arg0: i32, %arg1: i32) -> (i32, i32) {
    %c0_i32 = arith.constant 0 : i32
    %c0_i32_0 = arith.constant 0 : i32
    return %arg0, %c0_i32 : i32, i32
  }
}

</mosaic_0001>

<bundles_post_ra>
// kernel: tpu_custom_call.1
= control target key start
LH: loop header
LB: loop body
LE: loop exit
PB: predicated region body
PF: predicated region fallthrough
CT: control target
= control target key end

     0   :  { %10 = vsyncpa [#allocation4], 0  ;;  %s980_s0 = inlined_call_operand.vmem [shape: f32[16,32], index: 0, kind: input, shape index: {}]   ;;  %s981_s1 = inlined_call_operand.vmem [shape: f32[32,128], index: 1, kind: input, shape index: {}]   ;;  %s982_s2 = inlined_call_operand.vmem [shape: f32[1,128], index: 2, kind: input, shape index: {}]   ;;  %s983_s3 = inlined_call_operand.vmem [shape: f32[128,32], index: 3, kind: input, shape index: {}]   ;;  %s984_s4 = inlined_call_operand.vmem [shape: f32[1,32], index: 4, kind: input, shape index: {}]   ;;  %s985_s5 = inlined_call_operand.hbm [shape: f32[16,32], index: 5, kind: output, shape index: {}]  }
   0x1   :  { %12 = vsyncpa [#allocation4 + $0x1], 0  ;;  %s798_s18 = smov 0   ;;  %s800_s19 = smov 0  }
   0x2   :  { %s802_s20 = smov 0   ;;  %s804_s21 = smov 0  }
   0x3   :  { %s806_s22 = smov 0   ;;  %s808_s23 = smov 0  }
   0x4 LB: > { %s512_s24 = sadd.s32 4294967295, %s762_s23   ;;  %s513_s25 = sadd.s32 4294967294, %s762_s23   ;;  %s762_s23 = sphi %s808_s23, %s18_s23   ;;  %s758_s22 = sphi %s806_s22, %s992_s22   ;;  %s754_s21 = sphi %s804_s21, %s991_s21   ;;  %s750_s20 = sphi %s802_s20, %s990_s20   ;;  %s746_s19 = sphi %s800_s19, %s989_s19   ;;  %s742_s18 = sphi %s798_s18, %s988_s18  }
   0x5   : > { %s30_s26 = sadd.s32 1, %s758_s22  ;;  %s147_s27 = sadd.s32 1, %s750_s20 }
   0x6   : > { %p32_p0 = scmp.ge.s32.totalorder %s30_s26, 2  ;;  %p157_p1 = scmp.ne.s32.totalorder %s750_s20, %s746_s19 }
   0x7   : > { %p158_p2 = scmp.eq.s32.totalorder %s512_s24, 1  ;;  %p163_p3 = scmp.ne.s32.totalorder %s746_s19, %s742_s18 }
   0x8   : > { %s994_s26 = smov (%p32_p0, %s30_s26), 0  ;;  %p164_p5 = scmp.eq.s32.totalorder %s513_s25, 1 }
   0x9   : > { %p838_p4 = por %p158_p2, %p157_p1  ;;  %s144_s29 = ssub.s32 %s758_s22, %s994_s26 }
   0xa   : > { %p516_p6 = scmp.ge.s32.totalorder %s762_s23, 1  ;;  %p145_p7 = scmp.eq.s32.totalorder %s144_s29, 0 }
   0xb   : > { %p845_p8 = por %p164_p5, %p163_p3  ;;  %p201_p9 = scmp.lt.s32.totalorder %s762_s23, 3 }
   0xc   : > { %s851_s6 = scalar_select %p145_p7, %s750_s20, %s147_s27  }
   0xd   : > { %p202_p10 = pnand %p516_p6, %p201_p9 }
   0xe   : > { %v239_v0 = vld [vmem:[%s981_s1] sm:$0xff] (!%p202_p10)  ;;  %v240_v1 = vld [vmem:[%s981_s1 + $0x8] sm:$0xff] (!%p202_p10)  ;;  %v241_v2 = vld [vmem:[%s981_s1 + $0x10] sm:$0xff] (!%p202_p10)  ;;  %v764_v3 = vmov (!%p202_p10), 0.0|0.0   ;;  %vm765_vm0 = vmmov (!%p202_p10), 0   ;;  %v766_v6 = vmov (!%p202_p10), 0.0  }
   0xf   : > { %205 = sbr.rel (%p202_p10) target bundleno = 496 (0x1f0), region = 40  ;;  %594 = vmatprep.subr.bf16.mxu0 (!%p202_p10), %v764_v3  ;;  %v595_v4 = vpack.c.bf16 (!%p202_p10), %v240_v1, %v239_v0  ;;  %v242_v5 = vld [vmem:[%s981_s1 + $0x18] sm:$0xff] (!%p202_p10)  ;;  %556 = vmatprep.mubr.msk.f32.mxu0 (!%p202_p10), %vm765_vm0, %v766_v6  ;;  %p228_p11 = scmp.lt.s32.totalorder (!%p202_p10), %s754_s21, 1  ;;  %vm236_vm1 = vcmask (!%p202_p10), 261120   ;;  %v330_v7 = vld [vmem:[%s983_s3] sm:$0xff] (!%p202_p10)  ;;  %v331_v8 = vld [vmem:[%s983_s3 + $0x8] sm:$0xff] (!%p202_p10) }
  0x10   : > { %237 = vst.msk [vmem:[#allocation2] sm:$0xff] (!%p202_p10), %vm236_vm1, %v766_v6  ;;  %600 = vmatprep.subr.bf16.mxu1 (!%p202_p10), %v764_v3  ;;  %v601_v9 = vpack.c.bf16 (!%p202_p10), %v331_v8, %v330_v7  ;;  %v332_v10 = vld [vmem:[%s983_s3 + $0x10] sm:$0xff] (!%p202_p10)  ;;  %v333_v11 = vld [vmem:[%s983_s3 + $0x18] sm:$0xff] (!%p202_p10)  ;;  %591 = vmatprep.mubr.msk.f32.mxu1 (!%p202_p10), %vm765_vm0, %v766_v6  ;;  %v598_v12 = vpack.c.bf16 (!%p202_p10), %v242_v5, %v241_v2  ;;  %v334_v14 = vld [vmem:[%s983_s3 + $0x20] sm:$0xff] (!%p202_p10)  ;;  %s523_s13 = sshll.u32 (!%p202_p10), %s754_s21, 7 }
  0x11   : > { %596 = vmatpush3.bf16.msra.mxu0 (!%p202_p10), %v595_v4  ;;  %v604_v13 = vpack.c.bf16 (!%p202_p10), %v333_v11, %v332_v10  ;;  %v335_v15 = vld [vmem:[%s983_s3 + $0x28] sm:$0xff] (!%p202_p10)  ;;  %v336_v18 = vld [vmem:[%s983_s3 + $0x30] sm:$0xff] (!%p202_p10)  ;;  %v337_v19 = vld [vmem:[%s983_s3 + $0x38] sm:$0xff] (!%p202_p10)  ;;  %s932_s24 = scalar_lea.hbm (!%p202_p10), %s985_s5, %s523_s13 }
  0x12   : > { %597 = vmatprep.subr.bf16.mxu0 (!%p202_p10), %v764_v3  ;;  %602 = vmatpush3.bf16.msra.mxu1 (!%p202_p10), %v601_v9  ;;  %v607_v17 = vpack.c.bf16 (!%p202_p10), %v335_v15, %v334_v14  ;;  %v610_v20 = vpack.c.bf16 (!%p202_p10), %v337_v19, %v336_v18  ;;  %v338_v21 = vld [vmem:[%s983_s3 + $0x40] sm:$0xff] (!%p202_p10)  ;;  %v339_v22 = vld [vmem:[%s983_s3 + $0x48] sm:$0xff] (!%p202_p10)  ;;  %v340_v24 = vld [vmem:[%s983_s3 + $0x50] sm:$0xff] (!%p202_p10) }
  0x13   : > { %603 = vmatprep.subr.bf16.mxu1 (!%p202_p10), %v764_v3  ;;  %v613_v23 = vpack.c.bf16 (!%p202_p10), %v339_v22, %v338_v21  ;;  %v341_v25 = vld [vmem:[%s983_s3 + $0x58] sm:$0xff] (!%p202_p10)  ;;  %v342_v27 = vld [vmem:[%s983_s3 + $0x60] sm:$0xff] (!%p202_p10)  ;;  %v343_v28 = vld [vmem:[%s983_s3 + $0x68] sm:$0xff] (!%p202_p10) }
  0x14   : > { %v616_v26 = vpack.c.bf16 (!%p202_p10), %v341_v25, %v340_v24  ;;  %v619_v29 = vpack.c.bf16 (!%p202_p10), %v343_v28, %v342_v27  ;;  %v344_v30 = vld [vmem:[%s983_s3 + $0x70] sm:$0xff] (!%p202_p10)  ;;  %v345_v31 = vld [vmem:[%s983_s3 + $0x78] sm:$0xff] (!%p202_p10)  ;;  %v519_v33 = vld [vmem:[%s982_s2] ss:$0 sm:$0xff] (!%p202_p10) }
  0x15   : > { %599 = vmatpush3.bf16.msra.mxu0 (!%p202_p10), %v598_v12  ;;  %v622_v32 = vpack.c.bf16 (!%p202_p10), %v345_v31, %v344_v30  ;;  %v521_v46 = vld [vmem:[%s984_s4] ss:$0 sm:$0xff] (!%p202_p10) }
  0x16   : > { %s229_s8 = scalar_select %p228_p11, %s754_s21, 1  ;;  %605 = vmatpush3.bf16.msra.mxu1 %v604_v13 }
  0x17   : > { %606 = vmatprep.subr.bf16.mxu1 %v764_v3  ;;  %v329_v42 = vld [vmem:[#allocation2] sm:$0xff]  ;;  %s767_s21 = smov [#allocation3]  }
  0x18   : > { %s518_s9 = sshll.u32 %s229_s8, 3  ;;  %s688_s29 = sshll.u32 %s767_s21, 4  ;;  %s689_s29 = int_to_ptr.vmem [resolvable:$false] %s688_s29 }
  0x19   : > { %s231_s16 = scalar_lea.vmem %s980_s0, %s518_s9  ;;  %s225_s9 = sand.u32 1, %s746_s19  }
  0x1a   : > { %v238_v16 = vld [vmem:[%s231_s16] sm:$0xff]  ;;  %608 = vmatpush3.bf16.msra.mxu1 %v607_v17  ;;  %s517_s10 = sshll.u32 %s225_s9, 3  ;;  %s432_s25 = scalar_lea.sflag [#allocation4], %s225_s9 }
  0x1b   : > { %557 = vmatmul.mubr.msk.f32.vlgmr.msra.gmra.mrb[0].mxu0 %vm236_vm1, %v238_v16  ;;  %609 = vmatprep.subr.bf16.mxu1 %v764_v3  ;;  %s227_s14 = scalar_lea.vmem [#allocation3], %s517_s10  ;;  %s690_s7 = scalar_lea.vmem %s689_s29, 256 }
  0x1c   : > { %s445_s15 = sshll.u32 %s227_s14, 4  ;;  %s934_s15 = int_to_ptr.vmem [resolvable:$true] %s445_s15 }
  0x1d   : > { %s684_s27 = scalar_lea.vmem %s934_s15, 128  ;;  %p691_p1 = scmp.lt.s32.totalorder %s934_s15, %s689_s29 }
  0x1e   : > { %611 = vmatpush3.bf16.msra.mxu1 %v610_v20  ;;  %p685_p12 = scmp.ne.s32.totalorder %s934_s15, %s684_s27  ;;  %p692_p2 = scmp.lt.s32.totalorder %s690_s7, %s684_s27 }
  0x1f   : > { %612 = vmatprep.subr.bf16.mxu1 %v764_v3 }
  0x20   : > { %p686_p13 = pnand %p685_p12, %p838_p4  ;;  %p693_p3 = por %p692_p2, %p691_p1 }
  0x22   : > { %614 = vmatpush3.bf16.msra.mxu1 %v613_v23  ;;  %p687_p0 = pneg %p686_p13 }
  0x23   : > { %615 = vmatprep.subr.bf16.mxu1 %v764_v3 }
  0x24   : > { %p694_p5 = pnand %p693_p3, %p687_p0 }
  0x26   : > { %617 = vmatpush3.bf16.msra.mxu1 %v616_v26 }
  0x27   : > { %618 = vmatprep.subr.bf16.mxu1 %v764_v3 }
  0x2a   : > { %620 = vmatpush3.bf16.msra.mxu1 %v619_v29 }
  0x2b   : > { %621 = vmatprep.subr.bf16.mxu1 %v764_v3 }
  0x2e   : > { %623 = vmatpush3.bf16.msra.mxu1 %v622_v32 }
  0xee   : > { %v320_v34 = vpop.f32.mrb[0].mxu0 }
  0xef   : > { %v321_v35 = vadd.f32 %v519_v33, %v320_v34  ;;  %v558_v36 = vpop.f32.mrb[1].mxu0 }
  0xf1   : > { %v325_v37 = vmul.f32 0.70710677, %v321_v35  ;;  %v324_v39 = vmul.f32 0.5, %v321_v35 }
  0xf3   : > { %682 = verf.f32 %v325_v37 }
  0xfd   : > { %v683_v38 = vpop.eup %682 }
  0xfe   : > { %v327_v40 = vadd.f32 1.0, %v683_v38 }
 0x100   : > { %v328_v41 = vmul.f32 %v327_v40, %v324_v39 }
 0x102   : > { %592 = vmatmul.mubr.f32.vlgmr.msra.gmra.mrb[0].mxu1 %v328_v41 }
 0x1d5   : > { %v412_v43 = vpop.f32.mrb[0].mxu1 }
 0x1d6   : > { %v416_v44 = vadd.f32 %v412_v43, %v329_v42  ;;  %v593_v45 = vpop.f32.mrb[1].mxu1 }
 0x1d8   : > { %417 = vst.msk [vmem:[#allocation2] sm:$0xff] %vm236_vm1, %v416_v44 }
 0x1df   : > { %v421_v47 = vld [vmem:[#allocation2] sm:$0xff] }
 0x1e0   : > { %v429_v48 = vadd.f32 %v521_v46, %v421_v47 }
 0x1e2   : > { %430 = vst.msk [vmem:[%s227_s14] sm:$0xff] %vm236_vm1, %v429_v48 }
 0x1e3   : > { %697 = shalt.err (!%p694_p5)
}
 0x1e4   : > { %s698_s8 = scalar_lea.hbm %s932_s24, 128  ;;  %s702_s11 = scalar_lea.hbm %s985_s5, 256 }
 0x1e5   : > { %p699_p6 = scmp.ne.s32.totalorder %s932_s24, %s698_s8  ;;  %p703_p10 = scmp.lt.u32.totalorder %s932_s24, %s985_s5 }
 0x1e6   : > { %p704_p11 = scmp.lt.u32.totalorder %s702_s11, %s698_s8  ;;  %p706_p13 = scmp.lt.u32.totalorder %s698_s8, %s932_s24 }
 0x1e7   : > { %p700_p7 = pnand %p699_p6, %p838_p4 }
 0x1e8   : > { %p705_p12 = por %p704_p11, %p703_p10 }
 0x1e9   : > { %p701_p9 = pneg %p700_p7 }
 0x1ea   : > { %p707_p0 = por %p706_p13, %p705_p12 }
 0x1ec   : > { %p708_p1 = pnand %p707_p0, %p701_p9 }
 0x1ee   : > { %711 = shalt.err (!%p708_p1)
}
 0x1ef   : > { %624 = dma.vmem_to_hbm [thread:$0]  (%p838_p4), %s934_s15, 128, %s932_s24, %s432_s25  }
 0x1f0 PF: > { %p630_p2 = scmp.ge.s32.totalorder %s762_s23, 2  ;;  %s457_s14 = sand.u32 1, %s742_s18  }
 0x1f1   : > { %s458_s16 = scalar_lea.sflag [#allocation4], %s457_s14 }
 0x1f2   : > { %p627_p3 = pnand %p630_p2, %p845_p8 }
 0x1f4   : > { %737 = dma.done.wait (!%p627_p3), %s458_s16, 128  }
 0x1f5   : > { %739 = vsyncadd (!%p627_p3), %s458_s16, 4294967168  ;;  %s18_s23 = sadd.s32 1, %s762_s23   ;;  %s988_s18 = smov %s746_s19 }
 0x1f6   : > { %p15_p5 = scmp.ge.s32.totalorder %s18_s23, 4   ;;  %s989_s19 = smov %s750_s20 }
 0x1f7   : > { %s990_s20 = smov %s851_s6  ;;  %s991_s21 = smov %s758_s22 }
 0x1f8   : > { %s992_s22 = smov %s994_s26  ;;  %17 = sbr.rel (!%p15_p5) target bundleno = 4 (0x4), region = 83 }
 0x1ff   :  { %463 = vsyncpa [#allocation4], 1 }
 0x200   :  { %465 = vsyncpa [#allocation4 + $0x1], 1 }

</bundles_post_ra>
